<compile_context>
chip_gen: v7x
topology: tpu7x:2x2x1
jax: 0.10.0
libtpu: 0.0.40
codegen_flags: <defaults>
</compile_context>

<pallas_src>
import jax
import jax.numpy as jnp
from jax.experimental import pallas as pl
from jax.experimental.pallas import tpu as pltpu


def _round_up(x, m):
    return pl.cdiv(x, m) * m


def _make_kernel(hw, tk, needs_mask):
    def kernel(x_ref, out_ref, max_acc, sum_acc):
        k = pl.program_id(1)

        @pl.when(k == 0)
        def _init():
            max_acc[...] = jnp.full_like(max_acc, -jnp.inf)
            sum_acc[...] = jnp.zeros_like(sum_acc)

        # Accumulate in f32: exact for f32 inputs, avoids bf16/f16 precision
        # loss for large H*W; the kernel is HBM-bound so this is free.
        x = x_ref[...].astype(jnp.float32)
        if needs_mask:
            lane = jax.lax.broadcasted_iota(jnp.int32, x.shape, 1) + k * tk
            valid = lane < hw
            x_max = jnp.where(valid, x, -jnp.inf)
            x_sum = jnp.where(valid, x, 0.0)
        else:
            x_max = x
            x_sum = x

        max_acc[...] = jnp.maximum(
            max_acc[...], jnp.max(x_max, axis=-1, keepdims=True))
        sum_acc[...] = sum_acc[...] + jnp.sum(x_sum, axis=-1, keepdims=True)

        @pl.when(k == pl.num_programs(1) - 1)
        def _finalize():
            out_ref[:, 0:1] = max_acc[...].astype(out_ref.dtype)
            out_ref[:, 1:2] = (sum_acc[...] * (1.0 / hw)).astype(out_ref.dtype)

    return kernel


def adaptive_concat_pool2d(x, *, tk_cap=2048):
    """x: (N, C, H, W) float array -> (N, 2*C, 1, 1), max channels then avg."""
    n, c, h, w = x.shape
    rows, hw = n * c, h * w
    x2d = x.reshape(rows, hw)

    # Reduction-axis tiling: full extent when it fits comfortably, otherwise
    # 2048-lane tiles (multiple of 128) with zero padding + in-kernel mask.
    if hw <= tk_cap:
        tk_eff, hw_p = hw, hw
    else:
        tk_eff = tk_cap
        hw_p = _round_up(hw, tk_eff)
    k_tiles = hw_p // tk_eff
    needs_mask = hw_p != hw

    # Row tiling: target ~2 MiB (f32) of input per grid step, TM multiple of 8.
    target_elems = 512 * 1024
    tm = _round_up(max(1, target_elems // tk_eff), 8)
    tm = max(8, min(tm, 1024, _round_up(rows, 8)))
    rows_p = _round_up(rows, tm)

    pad_r, pad_k = rows_p - rows, hw_p - hw
    if pad_r or pad_k:
        x2d = jnp.pad(x2d, ((0, pad_r), (0, pad_k)))

    grid = (rows_p // tm, k_tiles)
    itemsize = jnp.dtype(x.dtype).itemsize

    out2 = pl.pallas_call(
        _make_kernel(hw, tk_eff, needs_mask),
        out_shape=jax.ShapeDtypeStruct((rows_p, 2), x.dtype),
        grid_spec=pltpu.PrefetchScalarGridSpec(
            num_scalar_prefetch=0,
            grid=grid,
            in_specs=[pl.BlockSpec((tm, tk_eff), lambda i, k: (i, k))],
            out_specs=pl.BlockSpec((tm, 2), lambda i, k: (i, 0)),
            scratch_shapes=[
                pltpu.VMEM((tm, 1), jnp.float32),   # running max
                pltpu.VMEM((tm, 1), jnp.float32),   # running sum
            ],
        ),
        compiler_params=pltpu.CompilerParams(
            # Row axis parallel (uses both TCs on v7x), reduction axis arbitrary.
            dimension_semantics=("parallel", "arbitrary"),
            # Above all scoped defaults, below every generation's physical VMEM.
            vmem_limit_bytes=48 * 1024 * 1024,
        ),
        cost_estimate=pl.CostEstimate(
            flops=2 * rows * hw,
            transcendentals=0,
            bytes_accessed=rows * hw * itemsize + rows * 2 * itemsize,
        ),
    )(x2d)

    out2 = out2[:rows].reshape(n, c, 2)          # (..., 0)=max, (..., 1)=avg
    # torch.cat([mp(x), ap(x)], 1): all max channels first, then all avg.
    return jnp.transpose(out2, (0, 2, 1)).reshape(n, 2 * c, 1, 1)


if __name__ == "__main__":
    key = jax.random.PRNGKey(0)
    x = jax.random.normal(key, (2, 4, 16, 16), dtype=jnp.float32)

    out = jax.jit(adaptive_concat_pool2d)(x)
    out = jax.block_until_ready(out)

    # Pure-JAX reference check.
    ref_max = jnp.max(x, axis=(2, 3), keepdims=True)
    ref_avg = jnp.mean(x, axis=(2, 3), keepdims=True)
    ref = jnp.concatenate([ref_max, ref_avg], axis=1)

    assert out.shape == (2, 8, 1, 1), out.shape
    assert jnp.allclose(out, ref, atol=1e-6, rtol=1e-6), float(
        jnp.max(jnp.abs(out - ref)))

    print("KERNEL_OK")
</pallas_src>

<mosaic_0001>
module attributes {stable_mosaic.version = 11 : i64} {
  func.func @kernel(%arg0: i32, %arg1: i32, %arg2: memref<8x256xf32, #tpu.memory_space<vmem>>, %arg3: memref<8x2xf32, #tpu.memory_space<vmem>>, %arg4: memref<8x1xf32, #tpu.memory_space<vmem>>, %arg5: memref<8x1xf32, #tpu.memory_space<vmem>>) attributes {dimension_semantics = [#tpu.dimension_semantics<parallel>, #tpu.dimension_semantics<arbitrary>], iteration_bounds = array<i64: 1, 1>, scalar_prefetch = 0 : i64, scratch_operands = 2 : i64, tpu.core_type = #tpu.core_type<tc>, window_params = [{transform_indices = @transform_0, window_bounds = array<i64: 8, 256>}, {transform_indices = @transform_1, window_bounds = array<i64: 8, 2>}]} {
    %c0_i32 = arith.constant 0 : i32
    %0 = arith.cmpi eq, %arg1, %c0_i32 : i32
    %1 = arith.extui %0 : i1 to i32
    %c0_i32_0 = arith.constant 0 : i32
    %2 = arith.cmpi ne, %1, %c0_i32_0 : i32
    scf.if %2 {
      %cst_13 = arith.constant 0xFF800000 : f32
      %17 = vector.broadcast %cst_13 : f32 to vector<8x1xf32>
      %c0_14 = arith.constant 0 : index
      %c0_15 = arith.constant 0 : index
      %18 = vector.load %arg4[%c0_14, %c0_15] : memref<8x1xf32, #tpu.memory_space<vmem>>, vector<8x1xf32>
      tpu.vector_store %arg4[%c0_14, %c0_15], %17 {strides = array<i32>} : memref<8x1xf32, #tpu.memory_space<vmem>>, vector<8x1xf32>,
      %cst_16 = arith.constant 0.000000e+00 : f32
      %19 = vector.broadcast %cst_16 : f32 to vector<8x1xf32>
      %c0_17 = arith.constant 0 : index
      %c0_18 = arith.constant 0 : index
      %20 = vector.load %arg5[%c0_17, %c0_18] : memref<8x1xf32, #tpu.memory_space<vmem>>, vector<8x1xf32>
      tpu.vector_store %arg5[%c0_17, %c0_18], %19 {strides = array<i32>} : memref<8x1xf32, #tpu.memory_space<vmem>>, vector<8x1xf32>,
    } else {
    }
    %c0 = arith.constant 0 : index
    %c0_1 = arith.constant 0 : index
    %3 = vector.load %arg2[%c0, %c0_1] : memref<8x256xf32, #tpu.memory_space<vmem>>, vector<8x256xf32>
    %c0_2 = arith.constant 0 : index
    %c0_3 = arith.constant 0 : index
    %4 = vector.load %arg4[%c0_2, %c0_3] : memref<8x1xf32, #tpu.memory_space<vmem>>, vector<8x1xf32>
    %cst = arith.constant dense<0xFF800000> : vector<8xf32>
    %5 = vector.multi_reduction <maximumf>, %3, %cst [1] : vector<8x256xf32> to vector<8xf32>
    %6 = vector.shape_cast %5 : vector<8xf32> to vector<8x1xf32>
    %7 = arith.maximumf %4, %6 : vector<8x1xf32>
    %c0_4 = arith.constant 0 : index
    %c0_5 = arith.constant 0 : index
    %8 = vector.load %arg4[%c0_4, %c0_5] : memref<8x1xf32, #tpu.memory_space<vmem>>, vector<8x1xf32>
    tpu.vector_store %arg4[%c0_4, %c0_5], %7 {strides = array<i32>} : memref<8x1xf32, #tpu.memory_space<vmem>>, vector<8x1xf32>,
    %c0_6 = arith.constant 0 : index
    %c0_7 = arith.constant 0 : index
    %9 = vector.load %arg5[%c0_6, %c0_7] : memref<8x1xf32, #tpu.memory_space<vmem>>, vector<8x1xf32>
    %cst_8 = arith.constant dense<0.000000e+00> : vector<8xf32>
    %10 = vector.multi_reduction <add>, %3, %cst_8 [1] : vector<8x256xf32> to vector<8xf32>
    %11 = vector.shape_cast %10 : vector<8xf32> to vector<8x1xf32>
    %12 = arith.addf %9, %11 : vector<8x1xf32>
    %c0_9 = arith.constant 0 : index
    %c0_10 = arith.constant 0 : index
    %13 = vector.load %arg5[%c0_9, %c0_10] : memref<8x1xf32, #tpu.memory_space<vmem>>, vector<8x1xf32>
    tpu.vector_store %arg5[%c0_9, %c0_10], %12 {strides = array<i32>} : memref<8x1xf32, #tpu.memory_space<vmem>>, vector<8x1xf32>,
    %c0_i32_11 = arith.constant 0 : i32
    %14 = arith.cmpi eq, %arg1, %c0_i32_11 : i32
    %15 = arith.extui %14 : i1 to i32
    %c0_i32_12 = arith.constant 0 : i32
    %16 = arith.cmpi ne, %15, %c0_i32_12 : i32
    scf.if %16 {
      %c0_13 = arith.constant 0 : index
      %c0_14 = arith.constant 0 : index
      %17 = vector.load %arg4[%c0_13, %c0_14] : memref<8x1xf32, #tpu.memory_space<vmem>>, vector<8x1xf32>
      %c0_15 = arith.constant 0 : index
      %c0_16 = arith.constant 0 : index
      %18 = vector.load %arg3[%c0_15, %c0_16] : memref<8x2xf32, #tpu.memory_space<vmem>>, vector<8x1xf32>
      tpu.vector_store %arg3[%c0_15, %c0_16], %17 {strides = array<i32>} : memref<8x2xf32, #tpu.memory_space<vmem>>, vector<8x1xf32>,
      %c0_17 = arith.constant 0 : index
      %c0_18 = arith.constant 0 : index
      %19 = vector.load %arg5[%c0_17, %c0_18] : memref<8x1xf32, #tpu.memory_space<vmem>>, vector<8x1xf32>
      %cst_19 = arith.constant 3.906250e-03 : f32
      %20 = vector.broadcast %cst_19 : f32 to vector<8x1xf32>
      %21 = arith.mulf %19, %20 : vector<8x1xf32>
      %c0_20 = arith.constant 0 : index
      %c1 = arith.constant 1 : index
      %22 = vector.load %arg3[%c0_20, %c1] : memref<8x2xf32, #tpu.memory_space<vmem>>, vector<8x1xf32>
      tpu.vector_store %arg3[%c0_20, %c1], %21 {strides = array<i32>} : memref<8x2xf32, #tpu.memory_space<vmem>>, vector<8x1xf32>,
    } else {
    }
    return
  }
  func.func @transform_0(%arg0: i32, %arg1: i32) -> (i32, i32) {
    %c0_i32 = arith.constant 0 : i32
    return %arg0, %arg1 : i32, i32
  }
  func.func @transform_1(%arg0: i32, %arg1: i32) -> (i32, i32) {
    %c0_i32 = arith.constant 0 : i32
    %c0_i32_0 = arith.constant 0 : i32
    return %arg0, %c0_i32 : i32, i32
  }
}

</mosaic_0001>

<bundles_post_ra>
// kernel: adaptive_concat_pool2d.1
= control target key start
LH: loop header
LB: loop body
LE: loop exit
PB: predicated region body
PF: predicated region fallthrough
CT: control target
= control target key end

     0   :  { %vm12_vm0 = vcmask 7168   ;;  %v50_v2 = vmov 0.0   ;;  %v51_v5 = vmov -inf   ;;  %vm41_vm1 = vcmask 15368   ;;  %s80_s0 = inlined_call_operand.vmem [shape: f32[8,256], index: 0, kind: input, shape index: {}]   ;;  %s81_s1 = inlined_call_operand.vmem [shape: f32[8,2], index: 1, kind: output, shape index: {}]  }
   0x1   :  { %v15_v0 = vld [vmem:[%s80_s0] sm:$0xff]  ;;  %v16_v1 = vld [vmem:[%s80_s0 + $0x8] sm:$0xff]  ;;  %14 = vst.msk [vmem:[#allocation3] sm:$0xff] %vm12_vm0, %v50_v2  ;;  %13 = vst.msk [vmem:[#allocation2] sm:$0xff] %vm12_vm0, %v51_v5  ;;  %s52_s0 = smov 1  }
   0x2   :  { %v25_v3 = vadd.f32 %v16_v1, %v15_v0  ;;  %v18_v4 = vmax.f32 %v15_v0, %v16_v1 }
   0x4   :  { %26 = vadd.xlane.f32.xlu0 %v25_v3 }
   0x8   :  { %19 = vmax.xlane.f32.xlu0 %v18_v4  ;;  %v24_v6 = vld [vmem:[#allocation3] sm:$0xff]  ;;  %v17_v9 = vld [vmem:[#allocation2] sm:$0xff] }
  0x91   :  { %v27_v7 = vpop.xlane.xlu0 %26 }
  0x92   :  { %v28_v8 = vadd.f32 %v27_v7, %v24_v6 }
  0x94   :  { %29 = vst.msk [vmem:[#allocation3] sm:$0xff] %vm12_vm0, %v28_v8 }
  0x95   :  { %v20_v10 = vpop.xlane.xlu0 %19 }
  0x96   :  { %v21_v11 = vmax.f32 %v17_v9, %v20_v10 }
  0x98   :  { %23 = vst.msk [vmem:[#allocation2] sm:$0xff] %vm12_vm0, %v21_v11 }
  0x9b   :  { %v35_v12 = vld [vmem:[#allocation3] sm:$0xff] }
  0x9c   :  { %v36_v13 = vmul.f32 0.00390625, %v35_v12 }
  0x9e   :  { %38 = vrot.lane.b32.xlu1 %v36_v13, %s52_s0 }
  0x9f   :  { %v33_v14 = vld [vmem:[#allocation2] sm:$0xff] }
  0xa0   :  { %34 = vst.msk [vmem:[%s81_s1] sm:$0xff] %vm12_vm0, %v33_v14 }
 0x110   :  { %v39_v15 = vpop.permute.xlu1 %38 }
 0x111   :  { %42 = vst.msk [vmem:[%s81_s1] sm:$0xff] %vm41_vm1, %v39_v15 }

</bundles_post_ra>
